<compile_context>
chip_gen: v6e
topology: v6e:2x2x1
jax: 0.10.0
libtpu: 0.0.40
codegen_flags: <defaults>
</compile_context>

<pallas_src>
import functools

import jax
import jax.numpy as jnp
from jax.experimental import pallas as pl
from jax.experimental.pallas import tpu as pltpu


# ---------------------------------------------------------------------------
# Pallas kernel: full BasicBlock, fused, single invocation (no grid)
# ---------------------------------------------------------------------------
def _basic_block_kernel(x_ref, wa_ref, wb_ref, sb_ref, out_ref, *, H, W, HW):
    x = x_ref[...]                                  # (Cp, N*HW) float32
    NHW = x.shape[1]

    # Channel-invariant boundary masks at (1, N*HW); sublane-broadcast in where.
    # Masks use the position WITHIN each image so rolls never cross images.
    pos = jax.lax.broadcasted_iota(jnp.int32, (1, NHW), 1)
    pimg = pos % HW                                 # position within image
    col = pimg % W                                  # column within row
    m_up = pimg >= W
    m_down = pimg < (H - 1) * W
    m_left = col > 0
    m_right = col < W - 1

    def stacked_taps(v):
        # v: (Cp, N*HW).  Shifts along the flattened spatial (lane) axis with
        # zero padding at image borders; taps stacked along sublanes so one
        # matmul contracts over all three at once.
        up = jnp.where(m_up, pltpu.roll(v, W, 1), 0.0)            # v[p - W]
        down = jnp.where(m_down, pltpu.roll(v, NHW - W, 1), 0.0)  # v[p + W]
        left = jnp.where(m_left, pltpu.roll(v, 1, 1), 0.0)        # v[p - 1]
        right = jnp.where(m_right, pltpu.roll(v, NHW - 1, 1), 0.0)  # v[p + 1]
        return jnp.concatenate([up + down, left + right, v], axis=0)  # (3Cp, NHW)

    b_a = sb_ref[0]   # my_layer #1 bn01 bias (scale pre-folded into wa)
    s_b = sb_ref[1]   # bn1 scale
    b_b = sb_ref[2]   # bn1 bias
    b_c = sb_ref[3]   # my_layer #2 bn01 bias (scale pre-folded into wb)
    s_d = sb_ref[4]   # bn2 scale
    b_d = sb_ref[5]   # bn2 bias

    # Layer 1: conv3x3 (+bn01 scale folded) -> +bias -> relu -> bn1 -> relu
    y1 = jnp.dot(wa_ref[...], stacked_taps(x),
                 preferred_element_type=jnp.float32) + b_a
    h = jnp.maximum(y1, 0.0)
    h = jnp.maximum(h * s_b + b_b, 0.0)

    # Layer 2: conv3x3 (+bn01 scale folded) -> +bias -> relu -> bn2 -> +id -> relu
    y2 = jnp.dot(wb_ref[...], stacked_taps(h),
                 preferred_element_type=jnp.float32) + b_c
    o = jnp.maximum(y2, 0.0)
    o = o * s_d + b_d + x                           # identity residual in VMEM
    out_ref[...] = jnp.maximum(o, 0.0).astype(out_ref.dtype)


# ---------------------------------------------------------------------------
# Parameter folding / wrapper (plain-JAX glue)
# ---------------------------------------------------------------------------
def fold_bn(gamma, beta, mean, var, eps=1e-5):
    scale = gamma / jnp.sqrt(var + eps)
    bias = beta - mean * scale
    return scale, bias


def basic_block_forward(x_nchw, params):
    """BasicBlock forward (stride=1, no downsample), NCHW in / NCHW out."""
    N, C, H, W = x_nchw.shape
    HW = H * W
    NHW = N * HW
    Cout = params['l1_W1'].shape[0]
    assert C == Cout, "identity residual requires Cin == Cout (no downsample)"
    Cp = ((C + 7) // 8) * 8                          # sublane-aligned channels

    # NCHW -> (C, N*HW): lane axis = image-major flattened spatial; pad C -> Cp.
    x_flat = jnp.transpose(x_nchw, (1, 0, 2, 3)).reshape(C, NHW).astype(jnp.float32)
    x_flat = jnp.pad(x_flat, ((0, Cp - C), (0, 0)))

    def pad_mat(m):
        return jnp.pad(m, ((0, Cp - m.shape[0]), (0, Cp - m.shape[1])))

    def pad_vec(v):
        return jnp.pad(v, (0, Cp - v.shape[0]))

    def pack_w(W1, W2, W3, scale):
        # taps: (up+down)->W1, (left+right)->W2, center->(W3 - 2*W1 - 2*W2);
        # pre-ReLU BN scale folded into the weight rows; one (Cp, 3*Cp) matrix.
        mats = [pad_mat(W1), pad_mat(W2), pad_mat(W3 - 2.0 * W1 - 2.0 * W2)]
        w = jnp.concatenate(mats, axis=1)
        return pad_vec(scale)[:, None] * w

    s_a, b_a = fold_bn(*params['l1_bn'])   # my_layer #1 .bn01
    s_b, b_b = fold_bn(*params['bn1'])     # BasicBlock.bn1
    s_c, b_c = fold_bn(*params['l2_bn'])   # my_layer #2 .bn01
    s_d, b_d = fold_bn(*params['bn2'])     # BasicBlock.bn2

    wa = pack_w(params['l1_W1'], params['l1_W2'], params['l1_W3'], s_a)  # (Cp,3Cp)
    wb = pack_w(params['l2_W1'], params['l2_W2'], params['l2_W3'], s_c)  # (Cp,3Cp)
    sb = jnp.stack([pad_vec(v) for v in (b_a, s_b, b_b, b_c, s_d, b_d)],
                   axis=0)[:, :, None]                                   # (6,Cp,1)

    kernel = functools.partial(_basic_block_kernel, H=H, W=W, HW=HW)
    out_flat = pl.pallas_call(
        kernel,
        out_shape=jax.ShapeDtypeStruct((Cp, NHW), jnp.float32),
        in_specs=[pl.BlockSpec(memory_space=pltpu.MemorySpace.VMEM)] * 4,
        out_specs=pl.BlockSpec(memory_space=pltpu.MemorySpace.VMEM),
    )(x_flat, wa, wb, sb)

    out = out_flat[:C].reshape(C, N, H, W)
    return jnp.transpose(out, (1, 0, 2, 3))


def init_params(key, in_c, out_c):
    ks = jax.random.split(key, 10)

    def xavier(k, o, i):
        # nn.init.xavier_normal_ on an (O, I, 1) tensor: std = sqrt(2 / (I + O))
        std = (2.0 / (i + o)) ** 0.5
        return jax.random.normal(k, (o, i), jnp.float32) * std

    def bn(k, c):
        k1, k2, k3, k4 = jax.random.split(k, 4)
        gamma = 1.0 + 0.1 * jax.random.normal(k1, (c,), jnp.float32)
        beta = 0.1 * jax.random.normal(k2, (c,), jnp.float32)
        mean = 0.05 * jax.random.normal(k3, (c,), jnp.float32)
        var = 1.0 + 0.1 * jax.random.uniform(k4, (c,), jnp.float32)
        return gamma, beta, mean, var

    return {
        'l1_W1': xavier(ks[0], out_c, in_c),
        'l1_W2': xavier(ks[1], out_c, in_c),
        'l1_W3': xavier(ks[2], out_c, in_c),
        'l2_W1': xavier(ks[3], out_c, out_c),
        'l2_W2': xavier(ks[4], out_c, out_c),
        'l2_W3': xavier(ks[5], out_c, out_c),
        'l1_bn': bn(ks[6], out_c),   # my_layer #1 .bn01
        'bn1':   bn(ks[7], out_c),   # BasicBlock.bn1
        'l2_bn': bn(ks[8], out_c),   # my_layer #2 .bn01
        'bn2':   bn(ks[9], out_c),   # BasicBlock.bn2
    }


# ---------------------------------------------------------------------------
# Pure-JAX reference (correctness sanity check)
# ---------------------------------------------------------------------------
def reference_forward(x_nchw, params):
    x = jnp.transpose(x_nchw, (0, 2, 3, 1)).astype(jnp.float32)

    def bn_apply(y, bnp):
        g, b, m, v = bnp
        return (y - m) / jnp.sqrt(v + 1e-5) * g + b

    f1 = jnp.array([[0., 1., 0.], [0., -2., 0.], [0., 1., 0.]], jnp.float32)
    f2 = jnp.array([[0., 0., 0.], [1., -2., 1.], [0., 0., 0.]], jnp.float32)
    f3 = jnp.array([[0., 0., 0.], [0., 1., 0.], [0., 0., 0.]], jnp.float32)

    def my_layer_ref(y, W1, W2, W3, bnp):
        k = (W1[:, :, None, None] * f1 + W2[:, :, None, None] * f2
             + W3[:, :, None, None] * f3)                # (O, I, 3, 3)
        k_hwio = jnp.transpose(k, (2, 3, 1, 0))
        y = jax.lax.conv_general_dilated(
            y, k_hwio, (1, 1), ((1, 1), (1, 1)),
            dimension_numbers=('NHWC', 'HWIO', 'NHWC'))
        return jnp.maximum(bn_apply(y, bnp), 0.0)

    h = my_layer_ref(x, params['l1_W1'], params['l1_W2'], params['l1_W3'], params['l1_bn'])
    h = jnp.maximum(bn_apply(h, params['bn1']), 0.0)
    o = my_layer_ref(h, params['l2_W1'], params['l2_W2'], params['l2_W3'], params['l2_bn'])
    o = bn_apply(o, params['bn2'])
    o = jnp.maximum(o + x, 0.0)
    return jnp.transpose(o, (0, 3, 1, 2))


if __name__ == "__main__":
    key = jax.random.PRNGKey(0)
    kx, kp = jax.random.split(key)

    N, C, H, W = 2, 4, 16, 16                 # BasicBlock(in=4, out=4, stride=1)
    x = jax.random.normal(kx, (N, C, H, W), jnp.float32)
    params = init_params(kp, C, C)

    out = jax.block_until_ready(basic_block_forward(x, params))
    assert out.shape == (N, C, H, W)

    ref = jax.block_until_ready(reference_forward(x, params))
    max_err = float(jnp.max(jnp.abs(out - ref)))
    if max_err > 1e-3:
        raise AssertionError(f"Pallas kernel mismatch vs reference: {max_err}")

    print("KERNEL_OK")
</pallas_src>

<mosaic_0001>
module attributes {stable_mosaic.version = 11 : i64} {
  func.func @_basic_block_kernel(%arg0: memref<8x512xf32, #tpu.memory_space<vmem>>, %arg1: memref<8x24xf32, #tpu.memory_space<vmem>>, %arg2: memref<8x24xf32, #tpu.memory_space<vmem>>, %arg3: memref<6x8x1xf32, #tpu.memory_space<vmem>>, %arg4: memref<8x512xf32, #tpu.memory_space<vmem>>) attributes {dimension_semantics = [], scalar_prefetch = 0 : i64, scratch_operands = 0 : i64, tpu.core_type = #tpu.core_type<tc>} {
    %c0 = arith.constant 0 : index
    %c0_0 = arith.constant 0 : index
    %0 = vector.load %arg0[%c0, %c0_0] : memref<8x512xf32, #tpu.memory_space<vmem>>, vector<8x512xf32>
    %1 = tpu.iota {dimensions = array<i32: 1>} : vector<1x512xi32>
    %c256_i32 = arith.constant 256 : i32
    %c0_i32 = arith.constant 0 : i32
    %2 = arith.cmpi eq, %c256_i32, %c0_i32 : i32
    %c1_i32 = arith.constant 1 : i32
    %3 = arith.select %2, %c1_i32, %c256_i32 : i32
    %4 = vector.broadcast %3 : i32 to vector<1x512xi32>
    %5 = arith.remsi %1, %4 : vector<1x512xi32>
    %c0_i32_1 = arith.constant 0 : i32
    %6 = vector.broadcast %c0_i32_1 : i32 to vector<1x512xi32>
    %7 = arith.cmpi ne, %5, %6 : vector<1x512xi32>
    %c0_i32_2 = arith.constant 0 : i32
    %8 = vector.broadcast %c0_i32_2 : i32 to vector<1x512xi32>
    %9 = arith.cmpi slt, %5, %8 : vector<1x512xi32>
    %c0_i32_3 = arith.constant 0 : i32
    %10 = arith.cmpi slt, %3, %c0_i32_3 : i32
    %11 = vector.broadcast %10 : i1 to vector<1x512xi1>
    %12 = vector.broadcast %11 : vector<1x512xi1> to vector<1x512xi1>
    %13 = arith.xori %9, %12 : vector<1x512xi1>
    %14 = arith.andi %13, %7 : vector<1x512xi1>
    %15 = vector.broadcast %3 : i32 to vector<1x512xi32>
    %16 = arith.addi %5, %15 : vector<1x512xi32>
    %17 = arith.select %14, %16, %5 : vector<1x512xi1>, vector<1x512xi32>
    %c16_i32 = arith.constant 16 : i32
    %c0_i32_4 = arith.constant 0 : i32
    %18 = arith.cmpi eq, %c16_i32, %c0_i32_4 : i32
    %c1_i32_5 = arith.constant 1 : i32
    %19 = arith.select %18, %c1_i32_5, %c16_i32 : i32
    %20 = vector.broadcast %19 : i32 to vector<1x512xi32>
    %21 = arith.remsi %17, %20 : vector<1x512xi32>
    %c0_i32_6 = arith.constant 0 : i32
    %22 = vector.broadcast %c0_i32_6 : i32 to vector<1x512xi32>
    %23 = arith.cmpi ne, %21, %22 : vector<1x512xi32>
    %c0_i32_7 = arith.constant 0 : i32
    %24 = vector.broadcast %c0_i32_7 : i32 to vector<1x512xi32>
    %25 = arith.cmpi slt, %21, %24 : vector<1x512xi32>
    %c0_i32_8 = arith.constant 0 : i32
    %26 = arith.cmpi slt, %19, %c0_i32_8 : i32
    %27 = vector.broadcast %26 : i1 to vector<1x512xi1>
    %28 = vector.broadcast %27 : vector<1x512xi1> to vector<1x512xi1>
    %29 = arith.xori %25, %28 : vector<1x512xi1>
    %30 = arith.andi %29, %23 : vector<1x512xi1>
    %31 = vector.broadcast %19 : i32 to vector<1x512xi32>
    %32 = arith.addi %21, %31 : vector<1x512xi32>
    %33 = arith.select %30, %32, %21 : vector<1x512xi1>, vector<1x512xi32>
    %c16_i32_9 = arith.constant 16 : i32
    %34 = vector.broadcast %c16_i32_9 : i32 to vector<1x512xi32>
    %35 = arith.cmpi sge, %17, %34 : vector<1x512xi32>
    %c240_i32 = arith.constant 240 : i32
    %36 = vector.broadcast %c240_i32 : i32 to vector<1x512xi32>
    %37 = arith.cmpi slt, %17, %36 : vector<1x512xi32>
    %c0_i32_10 = arith.constant 0 : i32
    %38 = vector.broadcast %c0_i32_10 : i32 to vector<1x512xi32>
    %39 = arith.cmpi sgt, %33, %38 : vector<1x512xi32>
    %c15_i32 = arith.constant 15 : i32
    %40 = vector.broadcast %c15_i32 : i32 to vector<1x512xi32>
    %41 = arith.cmpi slt, %33, %40 : vector<1x512xi32>
    %c0_11 = arith.constant 0 : index
    %c0_12 = arith.constant 0 : index
    %c0_13 = arith.constant 0 : index
    %42 = vector.load %arg3[%c0_11, %c0_12, %c0_13] : memref<6x8x1xf32, #tpu.memory_space<vmem>>, vector<1x8x1xf32>
    %43 = vector.shape_cast %42 : vector<1x8x1xf32> to vector<8x1xf32>
    %c1 = arith.constant 1 : index
    %c0_14 = arith.constant 0 : index
    %c0_15 = arith.constant 0 : index
    %44 = vector.load %arg3[%c1, %c0_14, %c0_15] : memref<6x8x1xf32, #tpu.memory_space<vmem>>, vector<1x8x1xf32>
    %45 = vector.shape_cast %44 : vector<1x8x1xf32> to vector<8x1xf32>
    %c2 = arith.constant 2 : index
    %c0_16 = arith.constant 0 : index
    %c0_17 = arith.constant 0 : index
    %46 = vector.load %arg3[%c2, %c0_16, %c0_17] : memref<6x8x1xf32, #tpu.memory_space<vmem>>, vector<1x8x1xf32>
    %47 = vector.shape_cast %46 : vector<1x8x1xf32> to vector<8x1xf32>
    %c3 = arith.constant 3 : index
    %c0_18 = arith.constant 0 : index
    %c0_19 = arith.constant 0 : index
    %48 = vector.load %arg3[%c3, %c0_18, %c0_19] : memref<6x8x1xf32, #tpu.memory_space<vmem>>, vector<1x8x1xf32>
    %49 = vector.shape_cast %48 : vector<1x8x1xf32> to vector<8x1xf32>
    %c4 = arith.constant 4 : index
    %c0_20 = arith.constant 0 : index
    %c0_21 = arith.constant 0 : index
    %50 = vector.load %arg3[%c4, %c0_20, %c0_21] : memref<6x8x1xf32, #tpu.memory_space<vmem>>, vector<1x8x1xf32>
    %51 = vector.shape_cast %50 : vector<1x8x1xf32> to vector<8x1xf32>
    %c5 = arith.constant 5 : index
    %c0_22 = arith.constant 0 : index
    %c0_23 = arith.constant 0 : index
    %52 = vector.load %arg3[%c5, %c0_22, %c0_23] : memref<6x8x1xf32, #tpu.memory_space<vmem>>, vector<1x8x1xf32>
    %53 = vector.shape_cast %52 : vector<1x8x1xf32> to vector<8x1xf32>
    %c0_24 = arith.constant 0 : index
    %c0_25 = arith.constant 0 : index
    %54 = vector.load %arg1[%c0_24, %c0_25] : memref<8x24xf32, #tpu.memory_space<vmem>>, vector<8x24xf32>
    %c16_i32_26 = arith.constant 16 : i32
    %55 = tpu.dynamic_rotate %0 by %c16_i32_26 dim 1 : vector<8x512xf32>, i32 -> vector<8x512xf32>
    %cst = arith.constant 0.000000e+00 : f32
    %56 = vector.shape_cast %35 : vector<1x512xi1> to vector<1x512xi1>
    %57 = vector.broadcast %56 : vector<1x512xi1> to vector<8x512xi1>
    %58 = vector.broadcast %cst : f32 to vector<8x512xf32>
    %59 = arith.select %57, %55, %58 : vector<8x512xi1>, vector<8x512xf32>
    %c496_i32 = arith.constant 496 : i32
    %60 = tpu.dynamic_rotate %0 by %c496_i32 dim 1 : vector<8x512xf32>, i32 -> vector<8x512xf32>
    %cst_27 = arith.constant 0.000000e+00 : f32
    %61 = vector.shape_cast %37 : vector<1x512xi1> to vector<1x512xi1>
    %62 = vector.broadcast %61 : vector<1x512xi1> to vector<8x512xi1>
    %63 = vector.broadcast %cst_27 : f32 to vector<8x512xf32>
    %64 = arith.select %62, %60, %63 : vector<8x512xi1>, vector<8x512xf32>
    %c1_i32_28 = arith.constant 1 : i32
    %65 = tpu.dynamic_rotate %0 by %c1_i32_28 dim 1 : vector<8x512xf32>, i32 -> vector<8x512xf32>
    %cst_29 = arith.constant 0.000000e+00 : f32
    %66 = vector.shape_cast %39 : vector<1x512xi1> to vector<1x512xi1>
    %67 = vector.broadcast %66 : vector<1x512xi1> to vector<8x512xi1>
    %68 = vector.broadcast %cst_29 : f32 to vector<8x512xf32>
    %69 = arith.select %67, %65, %68 : vector<8x512xi1>, vector<8x512xf32>
    %c511_i32 = arith.constant 511 : i32
    %70 = tpu.dynamic_rotate %0 by %c511_i32 dim 1 : vector<8x512xf32>, i32 -> vector<8x512xf32>
    %cst_30 = arith.constant 0.000000e+00 : f32
    %71 = vector.shape_cast %41 : vector<1x512xi1> to vector<1x512xi1>
    %72 = vector.broadcast %71 : vector<1x512xi1> to vector<8x512xi1>
    %73 = vector.broadcast %cst_30 : f32 to vector<8x512xf32>
    %74 = arith.select %72, %70, %73 : vector<8x512xi1>, vector<8x512xf32>
    %75 = arith.addf %59, %64 : vector<8x512xf32>
    %76 = arith.addf %69, %74 : vector<8x512xf32>
    %77 = tpu.concatenate %75, %76, %0 in 0 : vector<8x512xf32>, vector<8x512xf32>, vector<8x512xf32> -> vector<24x512xf32>
    %cst_31 = arith.constant dense<0.000000e+00> : vector<8x512xf32>
    %78 = tpu.matmul %54, %77, %cst_31 {dimension_numbers = #tpu.dot_dimension_numbers<[1], [0], [0], [1], [0, 0, 1, 1], [], []>} : vector<8x24xf32>, vector<24x512xf32>, vector<8x512xf32> -> vector<8x512xf32>
    %79 = vector.broadcast %43 : vector<8x1xf32> to vector<8x512xf32>
    %80 = arith.addf %78, %79 : vector<8x512xf32>
    %cst_32 = arith.constant 0.000000e+00 : f32
    %81 = vector.broadcast %cst_32 : f32 to vector<8x512xf32>
    %82 = arith.maximumf %80, %81 : vector<8x512xf32>
    %83 = vector.broadcast %45 : vector<8x1xf32> to vector<8x512xf32>
    %84 = arith.mulf %82, %83 : vector<8x512xf32>
    %85 = vector.broadcast %47 : vector<8x1xf32> to vector<8x512xf32>
    %86 = arith.addf %84, %85 : vector<8x512xf32>
    %cst_33 = arith.constant 0.000000e+00 : f32
    %87 = vector.broadcast %cst_33 : f32 to vector<8x512xf32>
    %88 = arith.maximumf %86, %87 : vector<8x512xf32>
    %c0_34 = arith.constant 0 : index
    %c0_35 = arith.constant 0 : index
    %89 = vector.load %arg2[%c0_34, %c0_35] : memref<8x24xf32, #tpu.memory_space<vmem>>, vector<8x24xf32>
    %c16_i32_36 = arith.constant 16 : i32
    %90 = tpu.dynamic_rotate %88 by %c16_i32_36 dim 1 : vector<8x512xf32>, i32 -> vector<8x512xf32>
    %cst_37 = arith.constant 0.000000e+00 : f32
    %91 = vector.shape_cast %35 : vector<1x512xi1> to vector<1x512xi1>
    %92 = vector.broadcast %91 : vector<1x512xi1> to vector<8x512xi1>
    %93 = vector.broadcast %cst_37 : f32 to vector<8x512xf32>
    %94 = arith.select %92, %90, %93 : vector<8x512xi1>, vector<8x512xf32>
    %c496_i32_38 = arith.constant 496 : i32
    %95 = tpu.dynamic_rotate %88 by %c496_i32_38 dim 1 : vector<8x512xf32>, i32 -> vector<8x512xf32>
    %cst_39 = arith.constant 0.000000e+00 : f32
    %96 = vector.shape_cast %37 : vector<1x512xi1> to vector<1x512xi1>
    %97 = vector.broadcast %96 : vector<1x512xi1> to vector<8x512xi1>
    %98 = vector.broadcast %cst_39 : f32 to vector<8x512xf32>
    %99 = arith.select %97, %95, %98 : vector<8x512xi1>, vector<8x512xf32>
    %c1_i32_40 = arith.constant 1 : i32
    %100 = tpu.dynamic_rotate %88 by %c1_i32_40 dim 1 : vector<8x512xf32>, i32 -> vector<8x512xf32>
    %cst_41 = arith.constant 0.000000e+00 : f32
    %101 = vector.shape_cast %39 : vector<1x512xi1> to vector<1x512xi1>
    %102 = vector.broadcast %101 : vector<1x512xi1> to vector<8x512xi1>
    %103 = vector.broadcast %cst_41 : f32 to vector<8x512xf32>
    %104 = arith.select %102, %100, %103 : vector<8x512xi1>, vector<8x512xf32>
    %c511_i32_42 = arith.constant 511 : i32
    %105 = tpu.dynamic_rotate %88 by %c511_i32_42 dim 1 : vector<8x512xf32>, i32 -> vector<8x512xf32>
    %cst_43 = arith.constant 0.000000e+00 : f32
    %106 = vector.shape_cast %41 : vector<1x512xi1> to vector<1x512xi1>
    %107 = vector.broadcast %106 : vector<1x512xi1> to vector<8x512xi1>
    %108 = vector.broadcast %cst_43 : f32 to vector<8x512xf32>
    %109 = arith.select %107, %105, %108 : vector<8x512xi1>, vector<8x512xf32>
    %110 = arith.addf %94, %99 : vector<8x512xf32>
    %111 = arith.addf %104, %109 : vector<8x512xf32>
    %112 = tpu.concatenate %110, %111, %88 in 0 : vector<8x512xf32>, vector<8x512xf32>, vector<8x512xf32> -> vector<24x512xf32>
    %cst_44 = arith.constant dense<0.000000e+00> : vector<8x512xf32>
    %113 = tpu.matmul %89, %112, %cst_44 {dimension_numbers = #tpu.dot_dimension_numbers<[1], [0], [0], [1], [0, 0, 1, 1], [], []>} : vector<8x24xf32>, vector<24x512xf32>, vector<8x512xf32> -> vector<8x512xf32>
    %114 = vector.broadcast %49 : vector<8x1xf32> to vector<8x512xf32>
    %115 = arith.addf %113, %114 : vector<8x512xf32>
    %cst_45 = arith.constant 0.000000e+00 : f32
    %116 = vector.broadcast %cst_45 : f32 to vector<8x512xf32>
    %117 = arith.maximumf %115, %116 : vector<8x512xf32>
    %118 = vector.broadcast %51 : vector<8x1xf32> to vector<8x512xf32>
    %119 = arith.mulf %117, %118 : vector<8x512xf32>
    %120 = vector.broadcast %53 : vector<8x1xf32> to vector<8x512xf32>
    %121 = arith.addf %119, %120 : vector<8x512xf32>
    %122 = arith.addf %121, %0 : vector<8x512xf32>
    %cst_46 = arith.constant 0.000000e+00 : f32
    %123 = vector.broadcast %cst_46 : f32 to vector<8x512xf32>
    %124 = arith.maximumf %122, %123 : vector<8x512xf32>
    %c0_47 = arith.constant 0 : index
    %c0_48 = arith.constant 0 : index
    %125 = vector.load %arg4[%c0_47, %c0_48] : memref<8x512xf32, #tpu.memory_space<vmem>>, vector<8x512xf32>
    tpu.vector_store %arg4[%c0_47, %c0_48], %124 {strides = array<i32>} : memref<8x512xf32, #tpu.memory_space<vmem>>, vector<8x512xf32>,
    return
  }
}

</mosaic_0001>

<bundles_post_ra>
// kernel: tpu_custom_call.1
= control target key start
LH: loop header
LB: loop body
LE: loop exit
PB: predicated region body
PF: predicated region fallthrough
CT: control target
= control target key end

     0   :  { %s747_s21 = smov 1   ;;  %s1050_s0 = inlined_call_operand.vmem [shape: f32[8,512], index: 0, kind: input, shape index: {}]   ;;  %s1051_s1 = inlined_call_operand.vmem [shape: f32[8,24], index: 1, kind: input, shape index: {}]   ;;  %s1052_s2 = inlined_call_operand.vmem [shape: f32[8,24], index: 2, kind: input, shape index: {}]   ;;  %s1053_s3 = inlined_call_operand.vmem [shape: f32[6,8,1], index: 3, kind: input, shape index: {}]   ;;  %s1054_s4 = inlined_call_operand.hbm [shape: f32[8,512], index: 4, kind: output, shape index: {}]  }
   0x1   :  { %v782_v0 = vld [vmem:[%s1050_s0 + $0x10] sm:$0xff]  ;;  %v787_v1 = vld [vmem:[%s1050_s0] sm:$0xff]  ;;  %v792_v2 = vld [vmem:[%s1050_s0 + $0x18] sm:$0xff] }
   0x2   :  { %205 = vrot.lane.b32.xlu1 %v782_v0, %s747_s21  ;;  %201 = vrot.lane.b32.xlu0 %v787_v1, %s747_s21  ;;  %v801_v3 = vld [vmem:[%s1050_s0 + $0x8] sm:$0xff] }
   0x3   :  { %9 = vsyncpa [#allocation3], 0  ;;  %294 = vmatprep.subr.mxu0 %v801_v3  ;;  %365 = vmatprep.subr.mxu1 %v792_v2  ;;  %s748_s24 = smov 127   ;;  %s749_s0 = smov 112   ;;  %v750_v4 = vmov 0.0   ;;  %v751_v5 = vmov 0   ;;  %v22_v9 = vlaneseq }
   0x4   :  { %366 = vmatpush1.msra.mxu1 %v782_v0  ;;  %295 = vmatpush1.msra.mxu0 %v787_v1  ;;  %s752_s25 = smov 16   ;;  %v707_v6 = vld [vmem:[%s1053_s3 + $0x8] sm:$0xff]  ;;  %v139_v7 = vld [vmem:[%s1053_s3] sm:$0xff]  ;;  %v708_v8 = vld [vmem:[%s1053_s3 + $0x10] sm:$0xff] }
   0x5   :  { %332 = vmatprep.mubr.f32.mxu0 %v750_v4  ;;  %403 = vmatprep.mubr.f32.mxu1 %v750_v4  ;;  %v846_v10 = vand.u32 127, %v22_v9  ;;  %v436_v60 = vld [vmem:[%s1052_s2] sm:$0xff]  ;;  %s753_s2 = smov [#allocation2]  }
   0x6   :  { %207 = vrot.lane.b32.xlu1 %v792_v2, %s747_s21  ;;  %203 = vrot.lane.b32.xlu0 %v801_v3, %s747_s21  ;;  %s699_s14 = sshll.u32 %s753_s2, 4  ;;  %s700_s14 = int_to_ptr.vmem [resolvable:$true] %s699_s14 }
   0x7   :  { %724 = vset.pattern.permute.xlu1 %v751_v5  ;;  %723 = vset.pattern.permute.xlu0 %v751_v5  ;;  %v849_v11 = vadd.s32 384, %v846_v10  ;;  %v24_v12 = vadd.s32 128, %v846_v10  ;;  %v853_v13 = vadd.s32 256, %v846_v10  ;;  %v31_v19 = vand.u32 255, %v846_v10  ;;  %s725_s15 = scalar_lea.vmem %s700_s14, 512  ;;  %p730_p1 = scmp.lt.s32.totalorder %s700_s14, %s700_s14 }
   0x8   :  { %vm209_vm0 = vcmp.lt.s32.totalorder %v846_v10, 1  ;;  %vm234_vm1 = vcmp.lt.s32.totalorder %v846_v10, 127  ;;  %vm184_vm10 = vcmp.lt.s32.totalorder %v846_v10, 112  ;;  %vm159_vm12 = vcmp.lt.s32.totalorder %v846_v10, 16  ;;  %p726_p0 = scmp.ne.s32.totalorder %s700_s14, %s725_s15  ;;  %p731_p2 = scmp.lt.s32.totalorder %s725_s15, %s725_s15 }
   0x9   :  { %v52_v16 = vand.u32 255, %v849_v11  ;;  %v38_v17 = vand.u32 255, %v24_v12  ;;  %v45_v18 = vand.u32 255, %v853_v13  ;;  %v866_v25 = vand.u32 15, %v31_v19 }
   0xa   :  { %228 = vrot.lane.b32.xlu1 %v801_v3, %s748_s24  ;;  %226 = vrot.lane.b32.xlu0 %v787_v1, %s748_s24  ;;  %vm926_vm14 = vcmp.ge.s32.totalorder %v31_v19, 16  ;;  %p732_p3 = por %p731_p2, %p730_p1 }
   0xb   :  { %v858_v22 = vand.u32 15, %v52_v16  ;;  %v860_v23 = vand.u32 15, %v38_v17  ;;  %v863_v24 = vand.u32 15, %v45_v18  ;;  %vm135_vm4 = vcmp.lt.s32.totalorder %v866_v25, 15 }
   0xc   :  { %vm131_vm9 = vcmp.gt.s32.totalorder %v866_v25, 0  ;;  %vm909_vm11 = vcmp.lt.s32.totalorder %v38_v17, 240  ;;  %vm920_vm13 = vcmp.lt.s32.totalorder %v52_v16, 240  ;;  %vm930_vm15 = vcmp.ge.s32.totalorder %v45_v18, 16  ;;  %p733_p4 = pnand %p732_p3, %p726_p0 }
   0xd   :  { %vm134_vm2 = vcmp.gt.s32.totalorder %v858_v22, 0  ;;  %vm132_vm3 = vcmp.gt.s32.totalorder %v860_v23, 0  ;;  %vm1055_vm5 = vcmp.lt.s32.totalorder %v858_v22, 15  ;;  %vm133_vm6 = vcmp.gt.s32.totalorder %v863_v24, 0 }
   0xe   :  { %232 = vrot.lane.b32.xlu1 %v792_v2, %s748_s24  ;;  %230 = vrot.lane.b32.xlu0 %v782_v0, %s748_s24  ;;  %vm136_vm7 = vcmp.lt.s32.totalorder %v860_v23, 15  ;;  %vm137_vm8 = vcmp.lt.s32.totalorder %v863_v24, 15 }
  0x12   :  { %178 = vrot.lane.b32.xlu1 %v801_v3, %s749_s0  ;;  %176 = vrot.lane.b32.xlu0 %v787_v1, %s749_s0 }
  0x16   :  { %182 = vrot.lane.b32.xlu1 %v792_v2, %s749_s0  ;;  %180 = vrot.lane.b32.xlu0 %v782_v0, %s749_s0 }
  0x1a   :  { %153 = vrot.lane.b32.xlu1 %v801_v3, %s752_s25  ;;  %151 = vrot.lane.b32.xlu0 %v787_v1, %s752_s25 }
  0x1e   :  { %157 = vrot.lane.b32.xlu1 %v792_v2, %s752_s25  ;;  %155 = vrot.lane.b32.xlu0 %v782_v0, %s752_s25 }
  0x22   :  { %416 = vperm.xlu1 %724, %v707_v6   ;;  %261 = vperm.xlu0 %723, %v139_v7  }
  0x26   :  { %425 = vperm.xlu1 %724, %v708_v8  }
  0x74   :  { %v206_v14 = vpop.permute.xlu1 %205  ;;  %v202_v15 = vpop.permute.xlu0 %201 }
  0x78   :  { %v208_v20 = vpop.permute.xlu1 %207  ;;  %v204_v21 = vpop.permute.xlu0 %203 }
  0x79   :  { %v210_v28 = vsel %vm209_vm0, %v206_v14, %v208_v20  ;;  %v212_v29 = vsel %vm209_vm0, %v202_v15, %v204_v21  ;;  %v211_v31 = vsel %vm209_vm0, %v204_v21, %v206_v14  ;;  %v213_v32 = vsel %vm209_vm0, %v208_v20, %v202_v15  ;;  %v150_v20 = vld [vmem:[%s1051_s1] sm:$0xff] }
  0x7a   :  { %v225_v33 = vsel %vm134_vm2, %v210_v28, 0.0  ;;  %v223_v34 = vsel %vm132_vm3, %v212_v29, 0.0  ;;  %v224_v41 = vsel %vm133_vm6, %v211_v31, 0.0  ;;  %v222_v45 = vsel %vm131_vm9, %v213_v32, 0.0 }
  0x7c   :  { %v229_v26 = vpop.permute.xlu1 %228  ;;  %v227_v27 = vpop.permute.xlu0 %226 }
  0x7d   :  { %v237_v30 = vsel %vm234_vm1, %v227_v27, %v229_v26 }
  0x7e   :  { %v247_v37 = vsel %vm135_vm4, %v237_v30, 0.0 }
  0x7f   :  { %v255_v49 = vadd.f32 %v247_v37, %v222_v45 }
  0x80   :  { %v233_v35 = vpop.permute.xlu1 %232  ;;  %v231_v36 = vpop.permute.xlu0 %230 }
  0x81   :  { %v238_v38 = vsel %vm234_vm1, %v233_v35, %v227_v27  ;;  %v235_v39 = vsel %vm234_vm1, %v231_v36, %v233_v35  ;;  %v236_v40 = vsel %vm234_vm1, %v229_v26, %v231_v36 }
  0x82   :  { %v250_v42 = vsel %vm1055_vm5, %v238_v38, 0.0  ;;  %v248_v43 = vsel %vm136_vm7, %v236_v40, 0.0  ;;  %v249_v44 = vsel %vm137_vm8, %v235_v39, 0.0  ;;  %vm264_vm5 = vcmask 195584  }
  0x83   :  { %v258_v46 = vadd.f32 %v250_v42, %v225_v33  ;;  %v256_v47 = vadd.f32 %v248_v43, %v223_v34  ;;  %v257_v48 = vadd.f32 %v249_v44, %v224_v41 }
  0x84   :  { %v179_v50 = vpop.permute.xlu1 %178  ;;  %v177_v51 = vpop.permute.xlu0 %176 }
  0x85   :  { %296 = vmatprep.subr.mxu0 %v256_v47  ;;  %367 = vmatprep.subr.mxu1 %v258_v46  ;;  %v187_v6 = vsel %vm184_vm10, %v177_v51, %v179_v50 }
  0x86   :  { %297 = vmatpush1.msra.mxu0 %v255_v49  ;;  %368 = vmatpush1.msra.mxu1 %v257_v48 }
  0x88   :  { %v183_v52 = vpop.permute.xlu1 %182  ;;  %v181_v53 = vpop.permute.xlu0 %180 }
  0x89   :  { %v186_v55 = vsel %vm184_vm10, %v179_v50, %v181_v53  ;;  %v188_v61 = vsel %vm184_vm10, %v183_v52, %v177_v51  ;;  %v185_v14 = vsel %vm184_vm10, %v181_v53, %v183_v52  ;;  %v709_v51 = vld [vmem:[%s1053_s3 + $0x18] sm:$0xff]  ;;  %v710_v52 = vld [vmem:[%s1053_s3 + $0x20] sm:$0xff]  ;;  %v711_v53 = vld [vmem:[%s1053_s3 + $0x28] sm:$0xff] }
  0x8a   :  { %v198_v58 = vsel %vm909_vm11, %v186_v55, 0.0  ;;  %v200_v9 = vsel %vm920_vm13, %v188_v61, 0.0 }
  0x8c   :  { %v154_v56 = vpop.permute.xlu1 %153  ;;  %v152_v57 = vpop.permute.xlu0 %151 }
  0x8d   :  { %v162_v59 = vsel %vm159_vm12, %v152_v57, %v154_v56 }
  0x8e   :  { %v252_v62 = vadd.f32 %v198_v58, %v162_v59 }
  0x90   :  { %v158_v7 = vpop.permute.xlu1 %157  ;;  %v156_v8 = vpop.permute.xlu0 %155  ;;  %298 = vmatprep.subr.mxu0 %v252_v62 }
  0x91   :  { %v163_v11 = vsel %vm159_vm12, %v158_v7, %v152_v57  ;;  %v160_v12 = vsel %vm159_vm12, %v156_v8, %v158_v7  ;;  %v161_v13 = vsel %vm159_vm12, %v154_v56, %v156_v8 }
  0x92   :  { %v172_v15 = vsel %vm926_vm14, %v163_v11, 0.0  ;;  %v174_v16 = vsel %vm930_vm15, %v161_v13, 0.0  ;;  %v254_v17 = vadd.f32 %v200_v9, %v160_v12 }
  0x93   :  { %v251_v18 = vadd.f32 %v187_v6, %v172_v15  ;;  %v253_v19 = vadd.f32 %v185_v14, %v174_v16 }
  0x94   :  { %369 = vmatprep.subr.mxu1 %v254_v17 }
  0x95   :  { %299 = vmatpush1.msra.mxu0 %v251_v18  ;;  %370 = vmatpush1.msra.mxu1 %v253_v19 }
  0x96   :  { %712 = vmatmul.mubr.msk.f32.vlgmr.msra.gmra.mxu0 %vm264_vm5, %v150_v20  ;;  %713 = vmatmul.mubr.msk.f32.vlgmr.msra.gmra.mxu1 %vm264_vm5, %v150_v20 }
  0x97   :  { %581 = vmatprep.mubr.f32.mxu0 %v750_v4  ;;  %652 = vmatprep.mubr.f32.mxu1 %v750_v4 }
  0x9d   :  { %v262_v21 = vpop.permute.xlu0 %261  ;;  %v417_v26 = vpop.permute.xlu1 %416 }
  0xa1   :  { %v426_v41 = vpop.permute.xlu1 %425 }
 0x156   :  { %v405_v27 = vpop.f32.mrf.mxu1  ;;  %v334_v28 = vpop.f32.mrf.mxu0 }
 0x157   :  { %v406_v29 = vadd.f32 %v405_v27, %v262_v21  ;;  %v335_v30 = vadd.f32 %v334_v28, %v262_v21 }
 0x158   :  { %v336_v31 = vpop.f32.mrf.mxu0  ;;  %v407_v32 = vpop.f32.mrf.mxu1 }
 0x159   :  { %v412_v33 = vmax.f32 %v406_v29, 0.0  ;;  %v410_v34 = vmax.f32 %v335_v30, 0.0  ;;  %v337_v35 = vadd.f32 %v336_v31, %v262_v21  ;;  %v408_v36 = vadd.f32 %v407_v32, %v262_v21 }
 0x15b   :  { %v419_v37 = vmul.f32 %v417_v26, %v410_v34  ;;  %v411_v38 = vmax.f32 %v337_v35, 0.0  ;;  %v413_v39 = vmax.f32 %v408_v36, 0.0  ;;  %v421_v40 = vmul.f32 %v417_v26, %v412_v33 }
 0x15d   :  { %v420_v42 = vmul.f32 %v417_v26, %v411_v38  ;;  %v422_v43 = vmul.f32 %v417_v26, %v413_v39  ;;  %v428_v4 = vadd.f32 %v426_v41, %v419_v37  ;;  %v430_v44 = vadd.f32 %v426_v41, %v421_v40 }
 0x15f   :  { %v429_v45 = vadd.f32 %v426_v41, %v420_v42  ;;  %v431_v46 = vadd.f32 %v426_v41, %v422_v43  ;;  %v432_v47 = vmax.f32 %v428_v4, 0.0  ;;  %v434_v50 = vmax.f32 %v430_v44, 0.0 }
 0x161   :  { %v433_v48 = vmax.f32 %v429_v45, 0.0  ;;  %v435_v49 = vmax.f32 %v431_v46, 0.0  ;;  %469 = vrot.lane.b32.xlu0 %v432_v47, %s747_s21 }
 0x163   :  { %614 = vmatprep.subr.mxu1 %v435_v49  ;;  %471 = vrot.lane.b32.xlu1 %v433_v48, %s747_s21 }
 0x164   :  { %543 = vmatprep.subr.mxu0 %v433_v48  ;;  %615 = vmatpush1.msra.mxu1 %v434_v50 }
 0x165   :  { %544 = vmatpush1.msra.mxu0 %v432_v47  ;;  %473 = vrot.lane.b32.xlu0 %v434_v50, %s747_s21 }
 0x167   :  { %475 = vrot.lane.b32.xlu1 %v435_v49, %s747_s21 }
 0x169   :  { %485 = vrot.lane.b32.xlu0 %v432_v47, %s748_s24 }
 0x16b   :  { %487 = vrot.lane.b32.xlu1 %v433_v48, %s748_s24 }
 0x16d   :  { %489 = vrot.lane.b32.xlu0 %v434_v50, %s748_s24 }
 0x16f   :  { %491 = vrot.lane.b32.xlu1 %v435_v49, %s748_s24 }
 0x171   :  { %453 = vrot.lane.b32.xlu0 %v432_v47, %s749_s0 }
 0x173   :  { %455 = vrot.lane.b32.xlu1 %v433_v48, %s749_s0 }
 0x175   :  { %457 = vrot.lane.b32.xlu0 %v434_v50, %s749_s0 }
 0x177   :  { %459 = vrot.lane.b32.xlu1 %v435_v49, %s749_s0 }
 0x179   :  { %437 = vrot.lane.b32.xlu0 %v432_v47, %s752_s25 }
 0x17b   :  { %439 = vrot.lane.b32.xlu1 %v433_v48, %s752_s25 }
 0x17d   :  { %441 = vrot.lane.b32.xlu0 %v434_v50, %s752_s25 }
 0x17f   :  { %443 = vrot.lane.b32.xlu1 %v435_v49, %s752_s25 }
 0x181   :  { %511 = vperm.xlu0 %723, %v709_v51  }
 0x183   :  { %665 = vperm.xlu1 %724, %v710_v52  }
 0x185   :  { %674 = vperm.xlu0 %723, %v711_v53  }
 0x1d3   :  { %v470_v55 = vpop.permute.xlu0 %469 }
 0x1d5   :  { %v472_v56 = vpop.permute.xlu1 %471 }
 0x1d6   :  { %v479_v62 = vsel %vm209_vm0, %v470_v55, %v472_v56 }
 0x1d7   :  { %v474_v57 = vpop.permute.xlu0 %473  ;;  %v482_v14 = vsel %vm132_vm3, %v479_v62, 0.0 }
 0x1d8   :  { %v478_v6 = vsel %vm209_vm0, %v472_v56, %v474_v57 }
 0x1d9   :  { %v476_v58 = vpop.permute.xlu1 %475  ;;  %v483_v15 = vsel %vm133_vm6, %v478_v6, 0.0 }
 0x1da   :  { %v480_v8 = vsel %vm209_vm0, %v476_v58, %v470_v55  ;;  %v477_v11 = vsel %vm209_vm0, %v474_v57, %v476_v58  ;;  %vm1064_vm0 = vcmp.lt.s32.totalorder %v858_v22, 15 }
 0x1db   :  { %v486_v59 = vpop.permute.xlu0 %485  ;;  %v481_v18 = vsel %vm131_vm9, %v480_v8, 0.0  ;;  %v484_v26 = vsel %vm134_vm2, %v477_v11, 0.0 }
 0x1dd   :  { %v488_v61 = vpop.permute.xlu1 %487 }
 0x1de   :  { %v495_v7 = vsel %vm234_vm1, %v486_v59, %v488_v61 }
 0x1df   :  { %v490_v9 = vpop.permute.xlu0 %489  ;;  %v497_v12 = vsel %vm135_vm4, %v495_v7, 0.0 }
 0x1e0   :  { %v494_v13 = vsel %vm234_vm1, %v488_v61, %v490_v9  ;;  %v505_v27 = vadd.f32 %v497_v12, %v481_v18 }
 0x1e1   :  { %v498_v16 = vsel %vm136_vm7, %v494_v13, 0.0  ;;  %v492_v17 = vpop.permute.xlu1 %491 }
 0x1e2   :  { %v506_v19 = vadd.f32 %v498_v16, %v482_v14  ;;  %v493_v20 = vsel %vm234_vm1, %v490_v9, %v492_v17  ;;  %v496_v21 = vsel %vm234_vm1, %v492_v17, %v486_v59 }
 0x1e3   :  { %v499_v28 = vsel %vm137_vm8, %v493_v20, 0.0  ;;  %v500_v23 = vsel %vm1064_vm0, %v496_v21, 0.0  ;;  %v454_v29 = vpop.permute.xlu0 %453 }
 0x1e4   :  { %v507_v25 = vadd.f32 %v499_v28, %v483_v15  ;;  %v508_v30 = vadd.f32 %v500_v23, %v484_v26  ;;  %545 = vmatprep.subr.mxu0 %v506_v19 }
 0x1e5   :  { %v456_v31 = vpop.permute.xlu1 %455  ;;  %546 = vmatpush1.msra.mxu0 %v505_v27 }
 0x1e6   :  { %616 = vmatprep.subr.mxu1 %v508_v30  ;;  %v463_v44 = vsel %vm184_vm10, %v454_v29, %v456_v31 }
 0x1e7   :  { %617 = vmatpush1.msra.mxu1 %v507_v25  ;;  %v458_v32 = vpop.permute.xlu0 %457 }
 0x1e8   :  { %v462_v34 = vsel %vm184_vm10, %v456_v31, %v458_v32 }
 0x1e9   :  { %v460_v33 = vpop.permute.xlu1 %459  ;;  %v466_v24 = vsel %vm909_vm11, %v462_v34, 0.0 }
 0x1ea   :  { %v464_v37 = vsel %vm184_vm10, %v460_v33, %v454_v29  ;;  %v461_v45 = vsel %vm184_vm10, %v458_v32, %v460_v33 }
 0x1eb   :  { %v438_v35 = vpop.permute.xlu0 %437  ;;  %v468_v54 = vsel %vm920_vm13, %v464_v37, 0.0 }
 0x1ed   :  { %v440_v36 = vpop.permute.xlu1 %439 }
 0x1ee   :  { %v447_v22 = vsel %vm159_vm12, %v438_v35, %v440_v36 }
 0x1ef   :  { %v502_v38 = vadd.f32 %v466_v24, %v447_v22  ;;  %v442_v39 = vpop.permute.xlu0 %441 }
 0x1f0   :  { %v446_v40 = vsel %vm159_vm12, %v440_v36, %v442_v39 }
 0x1f1   :  { %v451_v41 = vsel %vm930_vm15, %v446_v40, 0.0  ;;  %v444_v42 = vpop.permute.xlu1 %443  ;;  %547 = vmatprep.subr.mxu0 %v502_v38 }
 0x1f2   :  { %v445_v43 = vsel %vm159_vm12, %v442_v39, %v444_v42  ;;  %v448_v4 = vsel %vm159_vm12, %v444_v42, %v438_v35  ;;  %v503_v47 = vadd.f32 %v461_v45, %v451_v41 }
 0x1f3   :  { %v449_v5 = vsel %vm926_vm14, %v448_v4, 0.0  ;;  %v504_v46 = vadd.f32 %v468_v54, %v445_v43 }
 0x1f4   :  { %v501_v48 = vadd.f32 %v463_v44, %v449_v5 }
 0x1f5   :  { %618 = vmatprep.subr.mxu1 %v504_v46 }
 0x1f6   :  { %548 = vmatpush1.msra.mxu0 %v501_v48  ;;  %619 = vmatpush1.msra.mxu1 %v503_v47 }
 0x1f7   :  { %714 = vmatmul.mubr.msk.f32.vlgmr.msra.gmra.mxu0 %vm264_vm5, %v436_v60  ;;  %715 = vmatmul.mubr.msk.f32.vlgmr.msra.gmra.mxu1 %vm264_vm5, %v436_v60 }
 0x1fc   :  { %v512_v49 = vpop.permute.xlu0 %511 }
 0x1fe   :  { %v666_v59 = vpop.permute.xlu1 %665 }
 0x200   :  { %v675_v8 = vpop.permute.xlu0 %674 }
 0x2b7   :  { %v583_v10 = vpop.f32.mrf.mxu0  ;;  %v654_v50 = vpop.f32.mrf.mxu1 }
 0x2b8   :  { %v584_v51 = vadd.f32 %v583_v10, %v512_v49  ;;  %v655_v63 = vadd.f32 %v654_v50, %v512_v49 }
 0x2b9   :  { %v585_v52 = vpop.f32.mrf.mxu0  ;;  %v656_v53 = vpop.f32.mrf.mxu1 }
 0x2ba   :  { %v659_v55 = vmax.f32 %v584_v51, 0.0  ;;  %v661_v56 = vmax.f32 %v655_v63, 0.0  ;;  %v586_v57 = vadd.f32 %v585_v52, %v512_v49  ;;  %v657_v58 = vadd.f32 %v656_v53, %v512_v49 }
 0x2bc   :  { %v668_v61 = vmul.f32 %v666_v59, %v659_v55  ;;  %v670_v62 = vmul.f32 %v666_v59, %v661_v56  ;;  %v660_v6 = vmax.f32 %v586_v57, 0.0  ;;  %v662_v7 = vmax.f32 %v657_v58, 0.0 }
 0x2be   :  { %v677_v9 = vadd.f32 %v675_v8, %v668_v61  ;;  %v679_v11 = vadd.f32 %v675_v8, %v670_v62  ;;  %v669_v12 = vmul.f32 %v666_v59, %v660_v6  ;;  %v671_v13 = vmul.f32 %v666_v59, %v662_v7 }
 0x2c0   :  { %v681_v14 = vadd.f32 %v677_v9, %v787_v1  ;;  %v683_v15 = vadd.f32 %v679_v11, %v782_v0  ;;  %v678_v16 = vadd.f32 %v675_v8, %v669_v12  ;;  %v680_v17 = vadd.f32 %v675_v8, %v671_v13 }
 0x2c2   :  { %v685_v18 = vmax.f32 %v681_v14, 0.0  ;;  %v687_v19 = vmax.f32 %v683_v15, 0.0  ;;  %v682_v20 = vadd.f32 %v678_v16, %v801_v3  ;;  %v684_v21 = vadd.f32 %v680_v17, %v792_v2 }
 0x2c4   :  { %689 = vst [vmem:[#allocation2] sm:$0xff] %v685_v18  ;;  %691 = vst [vmem:[#allocation2 + $0x10] sm:$0xff] %v687_v19  ;;  %v686_v26 = vmax.f32 %v682_v20, 0.0  ;;  %v688_v27 = vmax.f32 %v684_v21, 0.0 }
 0x2c6   :  { %690 = vst [vmem:[#allocation2 + $0x8] sm:$0xff] %v686_v26  ;;  %692 = vst [vmem:[#allocation2 + $0x18] sm:$0xff] %v688_v27 }
 0x2c7   :  { %736 = shalt.err (!%p733_p4)
}
 0x2c8   :  { %702 = dma.vmem_to_hbm [thread:$0]  %s700_s14, 512, %s1054_s4, [#allocation3]  }
 0x2c9   :  { %745 = dma.done.wait [#allocation3], 512  }
 0x2ca   :  { %746 = vsyncadd [#allocation3], 4294966784 }
 0x2cb   :  { %706 = vsyncpa [#allocation3], 1 }

</bundles_post_ra>
